<compile_context>
chip_gen: v7x
topology: tpu7x:2x2x1
jax: 0.10.0
libtpu: 0.0.40
codegen_flags: <defaults>
</compile_context>

<pallas_src>
import functools

import jax
import jax.numpy as jnp
from jax import lax
from jax.experimental import pallas as pl
from jax.experimental.pallas import tpu as pltpu

# Module hyper-parameters (from AsymmetricLoss.__init__ defaults).
GAMMA_NEG = 4.0
GAMMA_POS = 1.0
CLIP = 0.05
EPS = 1e-08

_LANES = 128
_SUBLANES = 8

_TARGET_BLOCK_BYTES = 2 << 20    # ~2 MiB per input DMA block (step-overhead amortization)
_INPUT_VMEM_BUDGET = 16 << 20    # 2 inputs x 2 pipeline buffers must stay under this
_CHUNK_TARGET_BYTES = 256 << 10  # per-chunk f32 working-set target (bounds live temps)
_MAX_TILE_COLS = 4096            # label-axis tile (multiple of 128)


def _cdiv(a, b):
    return -(-a // b)


def _ceil_to(a, m):
    return _cdiv(a, m) * m


def _int_pow(base, n):
    """base ** n for a static non-negative integer n via repeated squaring (VPU only)."""
    n = int(n)
    result = None
    cur = base
    while n > 0:
        if n & 1:
            result = cur if result is None else result * cur
        n >>= 1
        if n:
            cur = cur * cur
    return jnp.ones_like(base) if result is None else result


def _asl_kernel(x_ref, y_ref, out_ref, *, gamma_neg, gamma_pos, clip, eps,
                fast_binary, compute_dtype, chunk_rows, batch, labels,
                ragged_rows, ragged_cols, single_col_block):
    tile_rows, tile_cols = x_ref.shape
    num_chunks = tile_rows // chunk_rows
    n_groups = tile_cols // _LANES

    i = pl.program_id(0)          # row-block index ("parallel")
    j = pl.program_id(1)          # label-block index ("arbitrary", accumulated)
    row_base = i * tile_rows
    col_base = j * tile_cols

    # Loop-invariant ragged-edge helpers (hoisted; only built when shapes are ragged).
    ridx = None
    col_invalid = None
    if ragged_rows:
        ridx = lax.broadcasted_iota(jnp.int32, (chunk_rows, tile_cols), 0)
    if ragged_cols:
        cidx = lax.broadcasted_iota(jnp.int32, (chunk_rows, tile_cols), 1)
        col_invalid = cidx >= (labels - col_base)

    def elem_loss(xb, yb, r0):
        # Elements that must contribute 0: NaN targets (PyTorch nan_to_num mask)
        # and out-of-bounds (ragged edge) rows/cols.  A final `where` (select,
        # not multiply) guarantees garbage padding can never leak NaN/Inf.
        invalid = jnp.isnan(yb)
        if ragged_rows:
            invalid = invalid | (ridx >= (batch - row_base - r0))
        if ragged_cols:
            invalid = invalid | col_invalid

        if fast_binary:
            # Binary targets + non-negative integer gammas.
            x = xb.astype(compute_dtype)      # bf16 stays packed bf16 on the VPU
            is_pos = yb > 0                   # NaN > 0 is False -> neg branch, zeroed below
            if clip is not None and clip > 0:
                t = jnp.maximum(x - clip, 0.0)    # == 1 - xs_neg  (focal base for negatives)
                xs_neg = 1.0 - t
            else:
                t = x
                xs_neg = 1.0 - x
            log_arg = jnp.where(is_pos, x, xs_neg).astype(jnp.float32)
            lg = jnp.log(jnp.maximum(log_arg, eps))           # single EUP log / element
            if gamma_pos > 0 or gamma_neg > 0:
                w_pos = _int_pow(1.0 - x, int(gamma_pos))
                w_neg = _int_pow(t, int(gamma_neg))
                w = jnp.where(is_pos, w_pos, w_neg).astype(jnp.float32)
                lg = lg * w
            return jnp.where(invalid, 0.0, lg)

        # General path (soft labels / non-integer gammas); matches the PyTorch math.
        xf = xb.astype(jnp.float32)
        yraw = yb.astype(jnp.float32)
        yf = jnp.where(jnp.isnan(yraw), 0.0, yraw)
        mask = jnp.where(yraw == 0.0, 1.0, yraw)   # NaN/OOB handled by `invalid`
        xs_pos = xf
        xs_neg = 1.0 - xf
        if clip is not None and clip > 0:
            xs_neg = jnp.minimum(xs_neg + clip, 1.0)
        loss = (yf * jnp.log(jnp.maximum(xs_pos, eps))
                + (1.0 - yf) * jnp.log(jnp.maximum(xs_neg, eps)))
        if gamma_neg > 0 or gamma_pos > 0:
            pt = xs_pos * yf + xs_neg * (1.0 - yf)
            one_sided_gamma = gamma_pos * yf + gamma_neg * (1.0 - yf)
            loss = loss * jnp.power(1.0 - pt, one_sided_gamma)
        return jnp.where(invalid, 0.0, loss * mask)

    def chunk_partial(r0):
        xb = x_ref[pl.ds(r0, chunk_rows), :]
        yb = y_ref[pl.ds(r0, chunk_rows), :]
        pm = elem_loss(xb, yb, r0)                     # (chunk_rows, tile_cols) f32
        # Lane-group fold: static 128-aligned slices, pure vreg VPU adds.
        folded = pm[:, 0:_LANES]
        for g in range(1, n_groups):
            folded = folded + pm[:, g * _LANES:(g + 1) * _LANES]
        # Sublane-tile fold: layout-preserving reshape at the (8,128) boundary.
        return jnp.sum(folded.reshape(chunk_rows // _SUBLANES, _SUBLANES, _LANES),
                       axis=0)

    if num_chunks == 1:
        acc8 = chunk_partial(0)
    else:
        acc8 = lax.fori_loop(
            0, num_chunks,
            lambda c, acc: acc + chunk_partial(pl.multiple_of(c * chunk_rows, _SUBLANES)),
            jnp.zeros((_SUBLANES, _LANES), jnp.float32))

    if single_col_block:
        out_ref[0] = acc8
    else:
        @pl.when(j == 0)
        def _():
            out_ref[0] = acc8

        @pl.when(j != 0)
        def _():
            out_ref[0] += acc8


def _choose_tiles(batch, labels, itemsize):
    """Pick (tile_rows, tile_cols, chunk_rows): ~2 MiB DMA blocks, >=2 row blocks,
    compute chunks bounding the in-kernel f32 working set."""
    lp = _ceil_to(labels, _LANES)
    tile_cols = min(lp, _MAX_TILE_COLS)
    row_bytes = tile_cols * itemsize

    rows = max(_SUBLANES, _TARGET_BLOCK_BYTES // row_bytes)
    # 2 inputs x 2 pipeline buffers must fit in the budget (v7x 64 MiB VMEM safe).
    rows = min(rows, max(_SUBLANES, _INPUT_VMEM_BUDGET // (4 * row_bytes)))
    rows = max(_SUBLANES, (rows // _SUBLANES) * _SUBLANES)

    bp = _ceil_to(batch, _SUBLANES)
    # At least 2 row blocks whenever the batch allows it (v7x megacore).
    rows = min(rows, max(_SUBLANES, _ceil_to(_cdiv(bp, 2), _SUBLANES)))
    # Prefer >= 8 row blocks when blocks would still be reasonably large.
    eighth = _ceil_to(_cdiv(bp, 8), _SUBLANES)
    if eighth * row_bytes >= (512 << 10):
        rows = min(rows, eighth)
    rows = max(_SUBLANES, min(rows, bp))

    # In-kernel compute chunk (decouples DMA block size from live f32 temps).
    chunk = _CHUNK_TARGET_BYTES // (tile_cols * 4)
    chunk = max(_SUBLANES, min(rows, (chunk // _SUBLANES) * _SUBLANES))
    # tile_rows must be a whole number of chunks.
    rows = max(chunk, (rows // chunk) * chunk)
    return int(rows), int(tile_cols), int(chunk)


def asymmetric_loss(x, y, *, gamma_neg=GAMMA_NEG, gamma_pos=GAMMA_POS,
                    clip=CLIP, eps=EPS, assume_binary_targets=True):
    """x, y: (batch, num_labels) float arrays. Returns scalar f32 loss.

    Targets are expected to be a multi-label binarized vector (with optional NaNs,
    which are masked out, as in the PyTorch module).  Set
    assume_binary_targets=False if targets may be soft (non-{0,1}); that path is
    ~4 transcendentals/element (EUP-bound) vs. 1 on the fast path.
    On v5e, passing bf16 inputs roughly halves the dominant HBM term.
    """
    assert x.ndim == 2 and x.shape == y.shape, (x.shape, y.shape)
    assert jnp.issubdtype(x.dtype, jnp.floating) and jnp.issubdtype(y.dtype, jnp.floating)
    B, L = x.shape

    x_item = jnp.dtype(x.dtype).itemsize
    y_item = jnp.dtype(y.dtype).itemsize
    tile_rows, tile_cols, chunk_rows = _choose_tiles(B, L, max(x_item, y_item))

    n_row_blocks = _cdiv(B, tile_rows)
    n_col_blocks = _cdiv(L, tile_cols)
    ragged_rows = (n_row_blocks * tile_rows != B)
    ragged_cols = (n_col_blocks * tile_cols != L)

    fast_binary = (
        assume_binary_targets
        and float(gamma_pos).is_integer() and float(gamma_neg).is_integer()
        and gamma_pos >= 0 and gamma_neg >= 0
    )
    compute_dtype = (jnp.bfloat16
                     if jnp.dtype(x.dtype) == jnp.dtype(jnp.bfloat16) else jnp.float32)

    kernel = functools.partial(
        _asl_kernel, gamma_neg=gamma_neg, gamma_pos=gamma_pos, clip=clip, eps=eps,
        fast_binary=fast_binary, compute_dtype=compute_dtype, chunk_rows=chunk_rows,
        batch=B, labels=L, ragged_rows=ragged_rows, ragged_cols=ragged_cols,
        single_col_block=(n_col_blocks == 1))

    # Explicit VMEM budget: 2 inputs x 2 pipeline buffers + chunk-sized f32 temps.
    block_bytes = tile_rows * tile_cols * (x_item + y_item)
    work_bytes = 12 * chunk_rows * tile_cols * 4
    vmem_limit = int(min(max(2 * block_bytes + work_bytes + (4 << 20), 32 << 20),
                         48 << 20))

    elems = B * L
    cost = pl.CostEstimate(
        flops=int((16 if fast_binary else 30) * elems),
        transcendentals=int(elems if fast_binary else 4 * elems),
        bytes_accessed=int(elems * (x_item + y_item)
                           + n_row_blocks * _SUBLANES * _LANES * 4))

    partials = pl.pallas_call(
        kernel,
        out_shape=jax.ShapeDtypeStruct((n_row_blocks, _SUBLANES, _LANES), jnp.float32),
        grid_spec=pltpu.PrefetchScalarGridSpec(
            num_scalar_prefetch=0,
            grid=(n_row_blocks, n_col_blocks),
            in_specs=[
                pl.BlockSpec((tile_rows, tile_cols), lambda i, j: (i, j)),
                pl.BlockSpec((tile_rows, tile_cols), lambda i, j: (i, j)),
            ],
            out_specs=pl.BlockSpec((1, _SUBLANES, _LANES), lambda i, j: (i, 0, 0)),
        ),
        compiler_params=pltpu.CompilerParams(
            dimension_semantics=("parallel", "arbitrary"),
            vmem_limit_bytes=vmem_limit),
        cost_estimate=cost,
    )(x, y)

    # Tiny final reduction of the lane-dense per-row-block partials.
    return -jnp.sum(partials)


def _reference(x, y, gamma_neg=GAMMA_NEG, gamma_pos=GAMMA_POS, clip=CLIP, eps=EPS):
    mask = jnp.where(y == 0.0, 1.0, y)
    mask = jnp.where(jnp.isnan(mask), 0.0, mask)
    yc = jnp.where(jnp.isnan(y), 0.0, y)
    xs_pos = x
    xs_neg = jnp.minimum(1.0 - x + clip, 1.0)
    los_pos = yc * jnp.log(jnp.maximum(xs_pos, eps))
    los_neg = (1.0 - yc) * jnp.log(jnp.maximum(xs_neg, eps))
    loss = los_pos + los_neg
    pt = xs_pos * yc + xs_neg * (1.0 - yc)
    w = jnp.power(1.0 - pt, gamma_pos * yc + gamma_neg * (1.0 - yc))
    return -jnp.sum(loss * w * mask)


if __name__ == "__main__":
    key = jax.random.PRNGKey(0)
    k1, k2, k3 = jax.random.split(key, 3)

    B, L = 16, 128  # (batch, num_labels) — multi-label binarized targets
    x = jax.random.uniform(k1, (B, L), dtype=jnp.float32, minval=0.01, maxval=0.99)
    y = (jax.random.uniform(k2, (B, L), dtype=jnp.float32) < 0.3).astype(jnp.float32)
    y = jnp.where(jax.random.uniform(k3, (B, L)) < 0.05, jnp.nan, y)

    ref = _reference(x, y)

    # Fast (binary-target, integer-gamma) specialization — the default.
    loss_fast = jax.block_until_ready(asymmetric_loss(x, y))
    assert jnp.allclose(loss_fast, ref, rtol=1e-5, atol=1e-4), (loss_fast, ref)

    # General path (soft-label-safe) must also match.
    loss_general = jax.block_until_ready(
        asymmetric_loss(x, y, assume_binary_targets=False))
    assert jnp.allclose(loss_general, ref, rtol=1e-5, atol=1e-4), (loss_general, ref)

    # Ragged batch/label dims: exercises the in-kernel edge masking (no host pad).
    B2, L2 = 13, 200
    k4, k5, k6 = jax.random.split(jax.random.PRNGKey(1), 3)
    x2 = jax.random.uniform(k4, (B2, L2), dtype=jnp.float32, minval=0.01, maxval=0.99)
    y2 = (jax.random.uniform(k5, (B2, L2), dtype=jnp.float32) < 0.3).astype(jnp.float32)
    y2 = jnp.where(jax.random.uniform(k6, (B2, L2)) < 0.05, jnp.nan, y2)
    loss2 = jax.block_until_ready(asymmetric_loss(x2, y2))
    ref2 = _reference(x2, y2)
    assert jnp.allclose(loss2, ref2, rtol=1e-5, atol=1e-4), (loss2, ref2)

    # Soft labels through the general path.
    k7, _ = jax.random.split(jax.random.PRNGKey(2))
    y3 = jax.random.uniform(k7, (B, L), dtype=jnp.float32, minval=0.0, maxval=1.0)
    loss3 = jax.block_until_ready(asymmetric_loss(x, y3, assume_binary_targets=False))
    ref3 = _reference(x, y3)
    assert jnp.allclose(loss3, ref3, rtol=1e-5, atol=1e-4), (loss3, ref3)

    # bf16 inputs exercise the packed-VPU compute path (loose tolerance vs f32 ref).
    xb = x.astype(jnp.bfloat16)
    yb = y.astype(jnp.bfloat16)
    loss_bf = jax.block_until_ready(asymmetric_loss(xb, yb))
    ref_bf = _reference(xb.astype(jnp.float32), yb.astype(jnp.float32))
    assert jnp.allclose(loss_bf, ref_bf, rtol=5e-2, atol=2.0), (loss_bf, ref_bf)

    # TODO(synk): a custom VJP would need to replicate disable_torch_grad_focal_loss
    # (focal weight treated as a constant in backward); forward pass here is unaffected.
    print("KERNEL_OK")
</pallas_src>

<mosaic_0001>
module attributes {stable_mosaic.version = 11 : i64} {
  func.func @_asl_kernel(%arg0: i32, %arg1: i32, %arg2: memref<8x128xf32, #tpu.memory_space<vmem>>, %arg3: memref<8x128xf32, #tpu.memory_space<vmem>>, %arg4: memref<1x8x128xf32, #tpu.memory_space<vmem>>) attributes {dimension_semantics = [#tpu.dimension_semantics<parallel>, #tpu.dimension_semantics<arbitrary>], iteration_bounds = array<i64: 2, 1>, scalar_prefetch = 0 : i64, scratch_operands = 0 : i64, tpu.core_type = #tpu.core_type<tc>, window_params = [{transform_indices = @transform_0, window_bounds = array<i64: 8, 128>}, {transform_indices = @transform_1, window_bounds = array<i64: 8, 128>}, {transform_indices = @transform_2, window_bounds = array<i64: 1, 8, 128>}]} {
    %c0 = arith.constant 0 : index
    %c0_0 = arith.constant 0 : index
    %0 = vector.load %arg2[%c0, %c0_0] : memref<8x128xf32, #tpu.memory_space<vmem>>, vector<8x128xf32>
    %c0_1 = arith.constant 0 : index
    %c0_2 = arith.constant 0 : index
    %1 = vector.load %arg3[%c0_1, %c0_2] : memref<8x128xf32, #tpu.memory_space<vmem>>, vector<8x128xf32>
    %2 = arith.cmpf one, %1, %1 : vector<8x128xf32>
    %cst = arith.constant 0.000000e+00 : f32
    %3 = vector.broadcast %cst : f32 to vector<8x128xf32>
    %4 = arith.cmpf ogt, %1, %3 : vector<8x128xf32>
    %cst_3 = arith.constant 5.000000e-02 : f32
    %5 = vector.broadcast %cst_3 : f32 to vector<8x128xf32>
    %6 = arith.subf %0, %5 : vector<8x128xf32>
    %cst_4 = arith.constant 0.000000e+00 : f32
    %7 = vector.broadcast %cst_4 : f32 to vector<8x128xf32>
    %8 = arith.maximumf %6, %7 : vector<8x128xf32>
    %cst_5 = arith.constant 1.000000e+00 : f32
    %9 = vector.broadcast %cst_5 : f32 to vector<8x128xf32>
    %10 = arith.subf %9, %8 : vector<8x128xf32>
    %11 = arith.select %4, %0, %10 : vector<8x128xi1>, vector<8x128xf32>
    %cst_6 = arith.constant 9.99999993E-9 : f32
    %12 = vector.broadcast %cst_6 : f32 to vector<8x128xf32>
    %13 = arith.maximumf %11, %12 : vector<8x128xf32>
    %14 = math.log %13 : vector<8x128xf32>
    %cst_7 = arith.constant 1.000000e+00 : f32
    %15 = vector.broadcast %cst_7 : f32 to vector<8x128xf32>
    %16 = arith.subf %15, %0 : vector<8x128xf32>
    %17 = arith.mulf %8, %8 : vector<8x128xf32>
    %18 = arith.mulf %17, %17 : vector<8x128xf32>
    %19 = arith.select %4, %16, %18 : vector<8x128xi1>, vector<8x128xf32>
    %20 = arith.mulf %14, %19 : vector<8x128xf32>
    %cst_8 = arith.constant 0.000000e+00 : f32
    %21 = vector.broadcast %cst_8 : f32 to vector<8x128xf32>
    %22 = arith.select %2, %21, %20 : vector<8x128xi1>, vector<8x128xf32>
    %23 = vector.shape_cast %22 : vector<8x128xf32> to vector<1x8x128xf32>
    %cst_9 = arith.constant dense<0.000000e+00> : vector<8x128xf32>
    %24 = vector.multi_reduction <add>, %23, %cst_9 [0] : vector<1x8x128xf32> to vector<8x128xf32>
    %c0_10 = arith.constant 0 : index
    %c0_11 = arith.constant 0 : index
    %c0_12 = arith.constant 0 : index
    %25 = vector.load %arg4[%c0_10, %c0_11, %c0_12] : memref<1x8x128xf32, #tpu.memory_space<vmem>>, vector<1x8x128xf32>
    %26 = vector.shape_cast %25 : vector<1x8x128xf32> to vector<8x128xf32>
    %27 = vector.shape_cast %24 : vector<8x128xf32> to vector<1x8x128xf32>
    tpu.vector_store %arg4[%c0_10, %c0_11, %c0_12], %27 {strides = array<i32>} : memref<1x8x128xf32, #tpu.memory_space<vmem>>, vector<1x8x128xf32>,
    return
  }
  func.func @transform_0(%arg0: i32, %arg1: i32) -> (i32, i32) {
    %c0_i32 = arith.constant 0 : i32
    return %arg0, %arg1 : i32, i32
  }
  func.func @transform_1(%arg0: i32, %arg1: i32) -> (i32, i32) {
    %c0_i32 = arith.constant 0 : i32
    return %arg0, %arg1 : i32, i32
  }
  func.func @transform_2(%arg0: i32, %arg1: i32) -> (i32, i32, i32) {
    %c0_i32 = arith.constant 0 : i32
    %c0_i32_0 = arith.constant 0 : i32
    %c0_i32_1 = arith.constant 0 : i32
    return %arg0, %c0_i32, %c0_i32_0 : i32, i32, i32
  }
}

</mosaic_0001>

<bundles_post_ra>
// kernel: tpu_custom_call.1
= control target key start
LH: loop header
LB: loop body
LE: loop exit
PB: predicated region body
PF: predicated region fallthrough
CT: control target
= control target key end

     0   :  { %7 = vsyncpa [#allocation3], 0  ;;  %s824_s0 = inlined_call_operand.hbm [shape: f32[16,128], index: 0, kind: input, shape index: {}]   ;;  %s825_s1 = inlined_call_operand.hbm [shape: f32[16,128], index: 1, kind: input, shape index: {}]   ;;  %s826_s2 = inlined_call_operand.hbm [shape: f32[2,8,128], index: 2, kind: output, shape index: {}]  }
   0x1   :  { %9 = vsyncpa [#allocation3 + $0x1], 0 }
   0x2   :  { %10 = vsyncpa [#allocation6], 0 }
   0x3   :  { %12 = vsyncpa [#allocation6 + $0x1], 0 }
   0x4   :  { %13 = vsyncpa [#allocation4], 0 }
   0x5   :  { %15 = vsyncpa [#allocation4 + $0x1], 0  ;;  %s599_s9 = smov 0   ;;  %s601_s10 = smov 0  }
   0x6   :  { %s603_s11 = smov 0   ;;  %s605_s12 = smov 0  }
   0x7   :  { %s607_s13 = smov 0   ;;  %s609_s14 = smov 0  }
   0x8 LB: > { %s347_s15 = sadd.s32 4294967295, %s579_s14   ;;  %s348_s16 = sadd.s32 4294967294, %s579_s14   ;;  %s579_s14 = sphi %s609_s14, %s21_s14   ;;  %s575_s13 = sphi %s607_s13, %s846_s13   ;;  %s571_s12 = sphi %s605_s12, %s845_s12   ;;  %s567_s11 = sphi %s603_s11, %s844_s11   ;;  %s563_s10 = sphi %s601_s10, %s843_s10   ;;  %s559_s9 = sphi %s599_s9, %s842_s9  }
   0x9   : > { %s33_s17 = sadd.s32 1, %s575_s13  ;;  %s42_s18 = sadd.s32 1, %s567_s11 }
   0xa   : > { %p35_p0 = scmp.ge.s32.totalorder %s33_s17, 2  ;;  %p49_p1 = scmp.ne.s32.totalorder %s567_s11, %s563_s10 }
   0xb   : > { %p50_p2 = scmp.eq.s32.totalorder %s579_s14, 0  ;;  %p55_p3 = scmp.ne.s32.totalorder %s563_s10, %s559_s9 }
   0xc   : > { %s848_s17 = smov (%p35_p0, %s33_s17), 0  ;;  %p56_p5 = scmp.eq.s32.totalorder %s347_s15, 0 }
   0xd   : > { %p640_p4 = por %p50_p2, %p49_p1  ;;  %s37_s20 = ssub.s32 %s575_s13, %s848_s17 }
   0xe   : > { %p107_p6 = scmp.eq.s32.totalorder %s347_s15, 1  ;;  %p40_p7 = scmp.eq.s32.totalorder %s37_s20, 0 }
   0xf   : > { %p646_p8 = por %p56_p5, %p55_p3  ;;  %p113_p10 = scmp.eq.s32.totalorder %s348_s16, 1 }
  0x10   : > { %p650_p9 = por %p107_p6, %p49_p1  ;;  %p381_p13 = scmp.lt.s32.totalorder %s579_s14, 2 }
  0x11   : > { %s830_s21 = scalar_select %p646_p8, 1, 0 }
  0x12   : > { %s831_s22 = scalar_select %p650_p9, 1, 0 }
  0x13   : > { %s655_s23 = scalar_select %p40_p7, %s567_s11, %s42_s18  }
  0x14   : > { %p657_p11 = por %p113_p10, %p55_p3  ;;  %s664_s25 = sand.u32 1, %s567_s11  }
  0x15   : > { %s351_s26 = sshll.u32 %s664_s25, 3  ;;  %s352_s27 = sshll.u32 %s575_s13, 7 }
  0x16   : > { %s832_s24 = scalar_select %p657_p11, 1, 0 }
  0x17   : > { %s673_s30 = scalar_lea.hbm %s824_s0, %s352_s27  ;;  %s137_s3 = scalar_lea.vmem [#allocation2], %s351_s26 }
  0x18   : > { %s145_s4 = sshll.u32 %s137_s3, 4  ;;  %p681_p0 = pnand %p381_p13, %p640_p4  ;;  %s677_s4 = int_to_ptr.vmem [resolvable:$true] %s145_s4 }
  0x19   : > { %s134_s6 = scalar_lea.sflag [#allocation3], %s664_s25  ;;  %s433_s7 = scalar_lea.hbm %s673_s30, 128 }
  0x1a   : > { %p434_p3 = scmp.ne.s32.totalorder %s673_s30, %s433_s7  ;;  %p435_p5 = pneg %p681_p0 }
  0x1b   : > { %s438_s16 = scalar_lea.hbm %s824_s0, 256  ;;  %p439_p4 = scmp.lt.u32.totalorder %s673_s30, %s824_s0 }
  0x1c   : > { %p436_p6 = pnand %p435_p5, %p434_p3  ;;  %p440_p10 = scmp.lt.u32.totalorder %s438_s16, %s433_s7 }
  0x1d   : > { %p442_p12 = scmp.lt.u32.totalorder %s433_s7, %s673_s30 }
  0x1e   : > { %p437_p7 = pneg %p436_p6  ;;  %p441_p13 = por %p440_p10, %p439_p4 }
  0x20   : > { %p443_p1 = por %p442_p12, %p441_p13 }
  0x22   : > { %p444_p2 = pnand %p443_p1, %p437_p7 }
  0x24   : > { %447 = shalt.err (!%p444_p2)
}
  0x25   : > { %s448_s20 = scalar_lea.vmem %s677_s4, 128  ;;  %s581_s28 = smov [#allocation2]  }
  0x26   : > { %p449_p3 = scmp.ne.s32.totalorder %s677_s4, %s448_s20  ;;  %s453_s29 = sshll.u32 %s581_s28, 4  ;;  %s454_s29 = int_to_ptr.vmem [resolvable:$false] %s453_s29 }
  0x27   : > { %s455_s3 = scalar_lea.vmem %s454_s29, 256  ;;  %p456_p9 = scmp.lt.s32.totalorder %s677_s4, %s454_s29 }
  0x28   : > { %p451_p6 = pnand %p449_p3, %p435_p5  ;;  %p457_p4 = scmp.lt.s32.totalorder %s455_s3, %s448_s20 }
  0x2a   : > { %p452_p11 = pneg %p451_p6  ;;  %p458_p10 = por %p457_p4, %p456_p9 }
  0x2c   : > { %p459_p12 = pnand %p458_p10, %p452_p11 }
  0x2e   : > { %462 = shalt.err (!%p459_p12)
}
  0x2f   : > { %373 = dma.hbm_to_vmem [thread:$0]  (!%p681_p0), %s673_s30, 128, %s677_s4, %s134_s6  }
  0x30   : > { %p834_p1 = scmp.lt.s32.totalorder %s579_s14, 3  ;;  %p835_p2 = scmp.ge.s32.totalorder %s579_s14, 1 }
  0x31   : > { %s726_s16 = scalar_lea.hbm %s825_s1, %s352_s27  ;;  %s156_s18 = scalar_lea.vmem [#allocation5], %s351_s26 }
  0x32   : > { %p717_p7 = pnand %p835_p2, %p834_p1  ;;  %s164_s19 = sshll.u32 %s156_s18, 4  ;;  %s165_s19 = int_to_ptr.vmem [resolvable:$true] %s164_s19 }
  0x33   : > { %s153_s30 = scalar_lea.sflag [#allocation6], %s664_s25  ;;  %s463_s4 = scalar_lea.hbm %s726_s16, 128 }
  0x34   : > { %s836_s7 = scalar_select %p717_p7, 1, 0 }
  0x35   : > { %p464_p9 = scmp.ne.s32.totalorder %s726_s16, %s463_s4  ;;  %s468_s27 = scalar_lea.hbm %s825_s1, 256 }
  0x36   : > { %p469_p3 = scmp.lt.u32.totalorder %s726_s16, %s825_s1  ;;  %p470_p6 = scmp.lt.u32.totalorder %s468_s27, %s463_s4 }
  0x37   : > { %p466_p11 = pnand %p464_p9, %p435_p5  ;;  %p472_p10 = scmp.lt.u32.totalorder %s463_s4, %s726_s16 }
  0x38   : > { %p471_p4 = por %p470_p6, %p469_p3 }
  0x39   : > { %p467_p13 = pneg %p466_p11 }
  0x3a   : > { %p473_p12 = por %p472_p10, %p471_p4 }
  0x3c   : > { %p474_p1 = pnand %p473_p12, %p467_p13 }
  0x3e   : > { %477 = shalt.err (!%p474_p1)
}
  0x3f   : > { %s478_s25 = scalar_lea.vmem %s165_s19, 128  ;;  %s582_s26 = smov [#allocation5]  }
  0x40   : > { %p479_p2 = scmp.ne.s32.totalorder %s165_s19, %s478_s25  ;;  %s483_s3 = sshll.u32 %s582_s26, 4  ;;  %s484_s3 = int_to_ptr.vmem [resolvable:$false] %s483_s3 }
  0x41   : > { %s485_s8 = scalar_lea.vmem %s484_s3, 256  ;;  %p486_p8 = scmp.lt.s32.totalorder %s165_s19, %s484_s3 }
  0x42   : > { %p481_p9 = pnand %p479_p2, %p435_p5  ;;  %p487_p7 = scmp.lt.s32.totalorder %s485_s8, %s478_s25 }
  0x44   : > { %p482_p11 = pneg %p481_p9  ;;  %p488_p3 = por %p487_p7, %p486_p8 }
  0x46   : > { %p489_p6 = pnand %p488_p3, %p482_p11 }
  0x48   : > { %492 = shalt.err (!%p489_p6)
}
  0x49   : > { %376 = dma.hbm_to_vmem [thread:$0]  (!%p681_p0), %s726_s16, 128, %s165_s19, %s153_s30  }
  0x4a   : > { %p837_p13 = scmp.ne.s32.totalorder %s836_s7, 0 }
  0x4b   : > { %s753_s15 = sand.u32 (!%p837_p13), 1, %s563_s10   ;;  %p838_p8 = scmp.ne.s32.totalorder (!%p837_p13), %s830_s21, 0 }
  0x4c   : > { %173 = sbr.rel (%p837_p13) target bundleno = 126 (0x7e), region = 28  ;;  %s756_s18 = sshll.u32 (!%p837_p13), %s753_s15, 3 }
  0x4d   : > { %s176_s4 = scalar_lea.sflag (!%p837_p13), [#allocation3], %s753_s15  ;;  %s179_s6 = scalar_lea.vmem (!%p837_p13), [#allocation2], %s756_s18 }
  0x53   : > { %546 = dma.done.wait (%p838_p8), %s176_s4, 128  }
  0x54   : > { %548 = vsyncadd (%p838_p8), %s176_s4, 4294967168  ;;  %s185_s5 = scalar_lea.sflag [#allocation6], %s753_s15  ;;  %s188_s7 = scalar_lea.vmem [#allocation5], %s756_s18 }
  0x55   : > { %550 = dma.done.wait (%p838_p8), %s185_s5, 128  }
  0x56   : > { %552 = vsyncadd (%p838_p8), %s185_s5, 4294967168  ;;  %v214_v0 = vld [vmem:[%s179_s6] sm:$0xff]  ;;  %v215_v1 = vld [vmem:[%s188_s7] sm:$0xff]  ;;  %s213_s21 = scalar_lea.vmem [#allocation7], %s756_s18  ;;  %s361_s19 = sshll.u32 %s571_s12, 7 }
  0x57   : > { %v359_v2 = vadd.f32 -0.05, %v214_v0  ;;  %vm217_vm0 = vcmp.gt.f32.partialorder %v215_v1, 0.0  ;;  %v225_v8 = vsub.f32 1.0, %v214_v0  ;;  %s247_s16 = sshll.u32 %s213_s21, 4  ;;  %vm216_vm1 = vcmp.ne.f32.partialorder %v215_v1, %v215_v1  ;;  %s777_s27 = scalar_lea.hbm %s826_s2, %s361_s19  ;;  %s772_s16 = int_to_ptr.vmem [resolvable:$true] %s247_s16 }
  0x58   : > { %s234_s28 = scalar_lea.sflag [#allocation4], %s753_s15  ;;  %s493_s29 = scalar_lea.vmem %s772_s16, 128 }
  0x59   : > { %v219_v3 = vmax.f32 %v359_v2, 0.0  ;;  %p494_p0 = scmp.ne.s32.totalorder %s772_s16, %s493_s29  ;;  %p839_p5 = scmp.ne.s32.totalorder %s831_s22, 0 }
  0x5a   : > { %s583_s12 = smov [#allocation7]  }
  0x5b   : > { %v220_v4 = vsub.f32 1.0, %v219_v3  ;;  %v226_v7 = vmul.f32 %v219_v3, %v219_v3  ;;  %p495_p7 = pnand %p494_p0, %p839_p5  ;;  %s497_s25 = sshll.u32 %s583_s12, 4  ;;  %s498_s25 = int_to_ptr.vmem [resolvable:$false] %s497_s25 }
  0x5c   : > { %s499_s26 = scalar_lea.vmem %s498_s25, 256  ;;  %p500_p10 = scmp.lt.s32.totalorder %s772_s16, %s498_s25 }
  0x5d   : > { %v221_v5 = vsel %vm217_vm0, %v214_v0, %v220_v4  ;;  %v227_v9 = vmul.f32 %v226_v7, %v226_v7  ;;  %p496_p4 = pneg %p495_p7  ;;  %p501_p12 = scmp.lt.s32.totalorder %s499_s26, %s493_s29 }
  0x5e   : > { %v222_v6 = vmax.f32 %v221_v5, 1e-08 }
  0x5f   : > { %v228_v11 = vsel %vm217_vm0, %v225_v8, %v227_v9  ;;  %p502_p1 = por %p501_p12, %p500_p10 }
  0x60   : > { %431 = vlog2.f32 %v222_v6 }
  0x61   : > { %p503_p2 = pnand %p502_p1, %p496_p4 }
  0x6a   : > { %v432_v10 = vpop.eup %431 }
  0x6b   : > { %v224_v12 = vmul.f32 0.6931472, %v432_v10 }
  0x6d   : > { %v229_v13 = vmul.f32 %v228_v11, %v224_v12 }
  0x6f   : > { %v230_v14 = vsel %vm216_vm1, 0.0, %v229_v13 }
  0x70   : > { %232 = vst [vmem:[%s213_s21] sm:$0xff] %v230_v14 }
  0x71   : > { %506 = shalt.err (!%p503_p2)
}
  0x72   : > { %s507_s3 = scalar_lea.hbm %s777_s27, 128  ;;  %s511_s18 = scalar_lea.hbm %s826_s2, 256 }
  0x73   : > { %p508_p9 = scmp.ne.s32.totalorder %s777_s27, %s507_s3  ;;  %p512_p6 = scmp.lt.u32.totalorder %s777_s27, %s826_s2 }
  0x74   : > { %p513_p13 = scmp.lt.u32.totalorder %s511_s18, %s507_s3  ;;  %p515_p0 = scmp.lt.u32.totalorder %s507_s3, %s777_s27 }
  0x75   : > { %p509_p11 = pnand %p508_p9, %p839_p5 }
  0x76   : > { %p514_p8 = por %p513_p13, %p512_p6 }
  0x77   : > { %p510_p3 = pneg %p509_p11 }
  0x78   : > { %p516_p7 = por %p515_p0, %p514_p8 }
  0x7a   : > { %p517_p4 = pnand %p516_p7, %p510_p3 }
  0x7c   : > { %520 = shalt.err (!%p517_p4)
}
  0x7d   : > { %368 = dma.vmem_to_hbm [thread:$0]  (%p839_p5), %s772_s16, 128, %s777_s27, %s234_s28  }
  0x7e PF: > { %s259_s5 = sand.u32 1, %s559_s9   ;;  %p840_p10 = scmp.ne.s32.totalorder %s832_s24, 0 }
  0x7f   : > { %p841_p12 = scmp.ge.s32.totalorder %s579_s14, 2  ;;  %s260_s7 = scalar_lea.sflag [#allocation4], %s259_s5 }
  0x81   : > { %p378_p1 = pnand %p841_p12, %p840_p10 }
  0x83   : > { %554 = dma.done.wait (!%p378_p1), %s260_s7, 128  }
  0x84   : > { %556 = vsyncadd (!%p378_p1), %s260_s7, 4294967168  ;;  %s21_s14 = sadd.s32 1, %s579_s14   ;;  %s842_s9 = smov %s563_s10 }
  0x85   : > { %p18_p2 = scmp.ge.s32.totalorder %s21_s14, 4   ;;  %s843_s10 = smov %s567_s11 }
  0x86   : > { %s844_s11 = smov %s655_s23  ;;  %s845_s12 = smov %s575_s13 }
  0x87   : > { %s846_s13 = smov %s848_s17  ;;  %20 = sbr.rel (!%p18_p2) target bundleno = 8 (0x8), region = 86 }
  0x8e   :  { %265 = vsyncpa [#allocation3], 1 }
  0x8f   :  { %267 = vsyncpa [#allocation3 + $0x1], 1 }
  0x90   :  { %268 = vsyncpa [#allocation6], 1 }
  0x91   :  { %270 = vsyncpa [#allocation6 + $0x1], 1 }
  0x92   :  { %271 = vsyncpa [#allocation4], 1 }
  0x93   :  { %273 = vsyncpa [#allocation4 + $0x1], 1 }

</bundles_post_ra>
